<compile_context>
chip_gen: v5e
topology: v5e:2x2
jax: 0.10.0
libtpu: 0.0.40
codegen_flags: <defaults>
</compile_context>

<pallas_src>
import functools

import jax
import jax.numpy as jnp
from jax.experimental import pallas as pl
from jax.experimental.pallas import tpu as pltpu


def _round_up(n, m):
    return ((n + m - 1) // m) * m


def _mlp_softmax_kernel(xT_ref, w1_ref, b1_ref, w2_ref, b2_ref, w3_ref, b3_ref,
                        oT_ref, *, compute_dtype):
    # x^T tile: (in_size, T).  Cast (no-op if already compute_dtype).
    xT = xT_ref[...].astype(compute_dtype)

    # fc1 + relu : (hidden, T).  MXU accumulates in f32; bias add in f32.
    h1 = jnp.dot(w1_ref[...], xT, preferred_element_type=jnp.float32) + b1_ref[...]
    h1 = jnp.maximum(h1, 0.0).astype(compute_dtype)

    # fc2 + relu : (hidden, T)
    h2 = jnp.dot(w2_ref[...], h1, preferred_element_type=jnp.float32) + b2_ref[...]
    h2 = jnp.maximum(h2, 0.0).astype(compute_dtype)

    # fc3 : (out_size, T), logits in f32 for a stable softmax.
    logits = jnp.dot(w3_ref[...], h2, preferred_element_type=jnp.float32) + b3_ref[...]

    # Numerically-stable softmax over the action axis (axis 0 in this layout).
    m = jnp.max(logits, axis=0, keepdims=True)
    e = jnp.exp(logits - m)
    denom = jnp.sum(e, axis=0, keepdims=True)
    oT_ref[...] = (e * pl.reciprocal(denom, approx=False)).astype(oT_ref.dtype)


def _default_compute_dtype():
    """bf16 intermediates on bf16-native VPUs (v6e/v7x), f32 elsewhere (v5e)."""
    try:
        kind = jax.devices()[0].device_kind.lower()
    except Exception:
        return jnp.float32
    if "v6" in kind or "v7" in kind:
        return jnp.bfloat16
    return jnp.float32


def multi_objective_policy_forward_fm(xT, params, *, block_batch=16384,
                                      x_dtype=jnp.bfloat16, compute_dtype=None,
                                      vmem_limit_bytes=None):
    """Feature-major forward pass (preferred, no layout copies).

    xT:      (input_size, B) activations, batch on the trailing axis.
    params:  PyTorch-layout weights: w1 (64, in), b1 (64,), w2 (64, 64),
             b2 (64,), w3 (out, 64), b3 (out,).
    Returns  (output_size, B) softmax probabilities, float32.

    block_batch: lane tile (samples per grid step); multiple of 128.
    x_dtype:     dtype used to stream x from HBM (bf16 halves the stream).
    compute_dtype: dtype of hidden activations / weights (None = auto per chip).
    vmem_limit_bytes: optional scoped-VMEM override if you push block_batch
                      beyond ~16K lanes (e.g. 32K on v6e).
    """
    in_size, B = xT.shape
    hidden = params["w1"].shape[0]
    out_size = params["w3"].shape[0]
    if compute_dtype is None:
        compute_dtype = _default_compute_dtype()
    assert block_batch % 128 == 0, "block_batch must be a multiple of 128"

    # ---- lane-tile selection -------------------------------------------------
    b128 = _round_up(B, 128)
    tile = min(block_batch, b128)
    # Prefer >=2 grid steps when the whole batch would fit one tile, so the
    # "parallel" grid axis can be sharded across both v7x TensorCores.  Costs
    # one extra ~0.35 us step on single-TC chips -- negligible.
    if tile == b128 and b128 >= 2 * 128:
        tile = _round_up((b128 + 1) // 2, 128)
    b_pad = _round_up(b128, tile)
    grid = (b_pad // tile,)

    # ---- operand prep (no transposes; pad only if needed) --------------------
    xT_c = xT.astype(x_dtype)
    if b_pad != B:
        xT_c = jnp.zeros((in_size, b_pad), x_dtype).at[:, :B].set(xT_c)

    w1 = params["w1"].astype(compute_dtype)
    w2 = params["w2"].astype(compute_dtype)
    w3 = params["w3"].astype(compute_dtype)
    b1 = params["b1"].reshape(hidden, 1).astype(jnp.float32)
    b2 = params["b2"].reshape(hidden, 1).astype(jnp.float32)
    b3 = params["b3"].reshape(out_size, 1).astype(jnp.float32)

    kernel = functools.partial(_mlp_softmax_kernel, compute_dtype=compute_dtype)

    outT = pl.pallas_call(
        kernel,
        out_shape=jax.ShapeDtypeStruct((out_size, b_pad), jnp.float32),
        grid_spec=pltpu.PrefetchScalarGridSpec(
            num_scalar_prefetch=0,
            grid=grid,
            in_specs=[
                pl.BlockSpec((in_size, tile), lambda i: (0, i)),     # x^T (streamed)
                pl.BlockSpec((hidden, in_size), lambda i: (0, 0)),   # w1 (resident)
                pl.BlockSpec((hidden, 1), lambda i: (0, 0)),         # b1
                pl.BlockSpec((hidden, hidden), lambda i: (0, 0)),    # w2
                pl.BlockSpec((hidden, 1), lambda i: (0, 0)),         # b2
                pl.BlockSpec((out_size, hidden), lambda i: (0, 0)),  # w3
                pl.BlockSpec((out_size, 1), lambda i: (0, 0)),       # b3
            ],
            out_specs=pl.BlockSpec((out_size, tile), lambda i: (0, i)),  # lane-dense
        ),
        compiler_params=pltpu.CompilerParams(
            dimension_semantics=("parallel",),     # shard batch tiles across TCs
            vmem_limit_bytes=vmem_limit_bytes,
        ),
    )(xT_c, w1, b1, w2, b2, w3, b3)

    return outT[:, :B]


def multi_objective_policy_forward(x, params, **kwargs):
    """PyTorch-convention wrapper: x (B, input_size) -> (B, output_size).

    Note: the two transposes here are separate XLA copies; latency-sensitive
    callers should use `multi_objective_policy_forward_fm` directly.
    """
    return multi_objective_policy_forward_fm(x.T, params, **kwargs).T


def init_params(key, input_size, output_size, hidden=64):
    """Deterministic init mimicking nn.Linear (uniform +-1/sqrt(fan_in)).
    Weights stored PyTorch-style: (out_features, in_features)."""
    k1, k2, k3, k4, k5, k6 = jax.random.split(key, 6)

    def lin(kw, kb, fan_in, fan_out):
        bound = 1.0 / jnp.sqrt(fan_in)
        w = jax.random.uniform(kw, (fan_out, fan_in), jnp.float32, -bound, bound)
        b = jax.random.uniform(kb, (fan_out,), jnp.float32, -bound, bound)
        return w, b

    w1, b1 = lin(k1, k2, input_size, hidden)
    w2, b2 = lin(k3, k4, hidden, hidden)
    w3, b3 = lin(k5, k6, hidden, output_size)
    return {"w1": w1, "b1": b1, "w2": w2, "b2": b2, "w3": w3, "b3": b3}


def _reference_forward(x, p):
    h1 = jnp.maximum(x @ p["w1"].T + p["b1"], 0.0)
    h2 = jnp.maximum(h1 @ p["w2"].T + p["b2"], 0.0)
    logits = h2 @ p["w3"].T + p["b3"]
    return jax.nn.softmax(logits, axis=-1)


if __name__ == "__main__":
    key = jax.random.PRNGKey(0)
    k_x, k_x2, k_p = jax.random.split(key, 3)

    input_size = 8    # small state vector
    output_size = 4   # number of discrete actions
    params = init_params(k_p, input_size, output_size)

    # Case 1: tiny batch, f32 intermediates (pads up to a single 128-lane tile).
    batch = 8
    x = jax.random.normal(k_x, (batch, input_size), jnp.float32)
    out = jax.block_until_ready(
        multi_objective_policy_forward(x, params, compute_dtype=jnp.float32)
    )
    # Reference on the bf16-cast input (the kernel streams x as bf16; math is f32).
    x_ref = x.astype(jnp.bfloat16).astype(jnp.float32)
    ref = _reference_forward(x_ref, params)
    assert out.shape == (batch, output_size)
    assert jnp.allclose(out, ref, atol=1e-4, rtol=1e-4), "mismatch (small batch, f32)"
    assert jnp.allclose(jnp.sum(out, axis=-1), 1.0, atol=1e-4)

    # Case 2: larger batch, multiple "parallel" grid steps, f32 intermediates.
    batch2 = 384
    x2 = jax.random.normal(k_x2, (batch2, input_size), jnp.float32)
    out2 = jax.block_until_ready(
        multi_objective_policy_forward(x2, params, block_batch=128,
                                       compute_dtype=jnp.float32)
    )
    ref2 = _reference_forward(x2.astype(jnp.bfloat16).astype(jnp.float32), params)
    assert out2.shape == (batch2, output_size)
    assert jnp.allclose(out2, ref2, atol=1e-4, rtol=1e-4), "mismatch (tiled, f32)"
    assert jnp.allclose(jnp.sum(out2, axis=-1), 1.0, atol=1e-4)

    # Case 3: feature-major API (zero-copy path) with bf16 intermediates
    # (the v6e/v7x fast path; compiles on every chip), looser tolerance.
    out3T = jax.block_until_ready(
        multi_objective_policy_forward_fm(x2.T, params,
                                          compute_dtype=jnp.bfloat16)
    )
    assert out3T.shape == (output_size, batch2)
    assert jnp.allclose(out3T.T, ref2, atol=1e-2, rtol=1e-2), "mismatch (fm, bf16)"
    assert jnp.allclose(jnp.sum(out3T, axis=0), 1.0, atol=1e-3)

    print("KERNEL_OK")
</pallas_src>

<mosaic_0001>
module attributes {stable_mosaic.version = 11 : i64} {
  func.func @_mlp_softmax_kernel(%arg0: i32, %arg1: memref<8x128xbf16, #tpu.memory_space<vmem>>, %arg2: memref<64x8xf32, #tpu.memory_space<vmem>>, %arg3: memref<64x1xf32, #tpu.memory_space<vmem>>, %arg4: memref<64x64xf32, #tpu.memory_space<vmem>>, %arg5: memref<64x1xf32, #tpu.memory_space<vmem>>, %arg6: memref<4x64xf32, #tpu.memory_space<vmem>>, %arg7: memref<4x1xf32, #tpu.memory_space<vmem>>, %arg8: memref<4x128xf32, #tpu.memory_space<vmem>>) attributes {dimension_semantics = [#tpu.dimension_semantics<parallel>], iteration_bounds = array<i64: 1>, scalar_prefetch = 0 : i64, scratch_operands = 0 : i64, tpu.core_type = #tpu.core_type<tc>, window_params = [{transform_indices = @transform_0, window_bounds = array<i64: 8, 128>}, {pipeline_mode = #tpu.pipeline_mode<synchronous>, transform_indices = @transform_1, window_bounds = array<i64: 64, 8>}, {pipeline_mode = #tpu.pipeline_mode<synchronous>, transform_indices = @transform_2, window_bounds = array<i64: 64, 1>}, {pipeline_mode = #tpu.pipeline_mode<synchronous>, transform_indices = @transform_3, window_bounds = array<i64: 64, 64>}, {pipeline_mode = #tpu.pipeline_mode<synchronous>, transform_indices = @transform_4, window_bounds = array<i64: 64, 1>}, {pipeline_mode = #tpu.pipeline_mode<synchronous>, transform_indices = @transform_5, window_bounds = array<i64: 4, 64>}, {pipeline_mode = #tpu.pipeline_mode<synchronous>, transform_indices = @transform_6, window_bounds = array<i64: 4, 1>}, {transform_indices = @transform_7, window_bounds = array<i64: 4, 128>}]} {
    %c0 = arith.constant 0 : index
    %c0_0 = arith.constant 0 : index
    %0 = vector.load %arg1[%c0, %c0_0] : memref<8x128xbf16, #tpu.memory_space<vmem>>, vector<8x128xbf16>
    %1 = arith.extf %0 : vector<8x128xbf16> to vector<8x128xf32>
    %c0_1 = arith.constant 0 : index
    %c0_2 = arith.constant 0 : index
    %2 = vector.load %arg2[%c0_1, %c0_2] : memref<64x8xf32, #tpu.memory_space<vmem>>, vector<64x8xf32>
    %cst = arith.constant dense<0.000000e+00> : vector<64x128xf32>
    %3 = tpu.matmul %2, %1, %cst {dimension_numbers = #tpu.dot_dimension_numbers<[1], [0], [0], [1], [0, 0, 1, 1], [], []>} : vector<64x8xf32>, vector<8x128xf32>, vector<64x128xf32> -> vector<64x128xf32>
    %c0_3 = arith.constant 0 : index
    %c0_4 = arith.constant 0 : index
    %4 = vector.load %arg3[%c0_3, %c0_4] : memref<64x1xf32, #tpu.memory_space<vmem>>, vector<64x1xf32>
    %5 = vector.broadcast %4 : vector<64x1xf32> to vector<64x128xf32>
    %6 = arith.addf %3, %5 : vector<64x128xf32>
    %cst_5 = arith.constant 0.000000e+00 : f32
    %7 = vector.broadcast %cst_5 : f32 to vector<64x128xf32>
    %8 = arith.maximumf %6, %7 : vector<64x128xf32>
    %c0_6 = arith.constant 0 : index
    %c0_7 = arith.constant 0 : index
    %9 = vector.load %arg4[%c0_6, %c0_7] : memref<64x64xf32, #tpu.memory_space<vmem>>, vector<64x64xf32>
    %cst_8 = arith.constant dense<0.000000e+00> : vector<64x128xf32>
    %10 = tpu.matmul %9, %8, %cst_8 {dimension_numbers = #tpu.dot_dimension_numbers<[1], [0], [0], [1], [0, 0, 1, 1], [], []>} : vector<64x64xf32>, vector<64x128xf32>, vector<64x128xf32> -> vector<64x128xf32>
    %c0_9 = arith.constant 0 : index
    %c0_10 = arith.constant 0 : index
    %11 = vector.load %arg5[%c0_9, %c0_10] : memref<64x1xf32, #tpu.memory_space<vmem>>, vector<64x1xf32>
    %12 = vector.broadcast %11 : vector<64x1xf32> to vector<64x128xf32>
    %13 = arith.addf %10, %12 : vector<64x128xf32>
    %cst_11 = arith.constant 0.000000e+00 : f32
    %14 = vector.broadcast %cst_11 : f32 to vector<64x128xf32>
    %15 = arith.maximumf %13, %14 : vector<64x128xf32>
    %c0_12 = arith.constant 0 : index
    %c0_13 = arith.constant 0 : index
    %16 = vector.load %arg6[%c0_12, %c0_13] : memref<4x64xf32, #tpu.memory_space<vmem>>, vector<4x64xf32>
    %cst_14 = arith.constant dense<0.000000e+00> : vector<4x128xf32>
    %17 = tpu.matmul %16, %15, %cst_14 {dimension_numbers = #tpu.dot_dimension_numbers<[1], [0], [0], [1], [0, 0, 1, 1], [], []>} : vector<4x64xf32>, vector<64x128xf32>, vector<4x128xf32> -> vector<4x128xf32>
    %c0_15 = arith.constant 0 : index
    %c0_16 = arith.constant 0 : index
    %18 = vector.load %arg7[%c0_15, %c0_16] : memref<4x1xf32, #tpu.memory_space<vmem>>, vector<4x1xf32>
    %19 = vector.broadcast %18 : vector<4x1xf32> to vector<4x128xf32>
    %20 = arith.addf %17, %19 : vector<4x128xf32>
    %cst_17 = arith.constant dense<0xFF800000> : vector<128xf32>
    %21 = vector.multi_reduction <maximumf>, %20, %cst_17 [0] : vector<4x128xf32> to vector<128xf32>
    %22 = vector.shape_cast %21 : vector<128xf32> to vector<1x128xf32>
    %23 = vector.broadcast %22 : vector<1x128xf32> to vector<4x128xf32>
    %24 = arith.subf %20, %23 : vector<4x128xf32>
    %25 = math.exp %24 : vector<4x128xf32>
    %cst_18 = arith.constant dense<0.000000e+00> : vector<128xf32>
    %26 = vector.multi_reduction <add>, %25, %cst_18 [0] : vector<4x128xf32> to vector<128xf32>
    %27 = vector.shape_cast %26 : vector<128xf32> to vector<1x128xf32>
    %28 = tpu.reciprocal %27 : vector<1x128xf32> -> vector<1x128xf32>
    %29 = vector.broadcast %28 : vector<1x128xf32> to vector<4x128xf32>
    %30 = arith.mulf %25, %29 : vector<4x128xf32>
    %c0_19 = arith.constant 0 : index
    %c0_20 = arith.constant 0 : index
    %31 = vector.load %arg8[%c0_19, %c0_20] : memref<4x128xf32, #tpu.memory_space<vmem>>, vector<4x128xf32>
    tpu.vector_store %arg8[%c0_19, %c0_20], %30 {strides = array<i32>} : memref<4x128xf32, #tpu.memory_space<vmem>>, vector<4x128xf32>,
    return
  }
  func.func @transform_0(%arg0: i32) -> (i32, i32) {
    %c0_i32 = arith.constant 0 : i32
    %c0_i32_0 = arith.constant 0 : i32
    return %c0_i32, %arg0 : i32, i32
  }
  func.func @transform_1(%arg0: i32) -> (i32, i32) {
    %c0_i32 = arith.constant 0 : i32
    %c0_i32_0 = arith.constant 0 : i32
    %c0_i32_1 = arith.constant 0 : i32
    return %c0_i32, %c0_i32_0 : i32, i32
  }
  func.func @transform_2(%arg0: i32) -> (i32, i32) {
    %c0_i32 = arith.constant 0 : i32
    %c0_i32_0 = arith.constant 0 : i32
    %c0_i32_1 = arith.constant 0 : i32
    return %c0_i32, %c0_i32_0 : i32, i32
  }
  func.func @transform_3(%arg0: i32) -> (i32, i32) {
    %c0_i32 = arith.constant 0 : i32
    %c0_i32_0 = arith.constant 0 : i32
    %c0_i32_1 = arith.constant 0 : i32
    return %c0_i32, %c0_i32_0 : i32, i32
  }
  func.func @transform_4(%arg0: i32) -> (i32, i32) {
    %c0_i32 = arith.constant 0 : i32
    %c0_i32_0 = arith.constant 0 : i32
    %c0_i32_1 = arith.constant 0 : i32
    return %c0_i32, %c0_i32_0 : i32, i32
  }
  func.func @transform_5(%arg0: i32) -> (i32, i32) {
    %c0_i32 = arith.constant 0 : i32
    %c0_i32_0 = arith.constant 0 : i32
    %c0_i32_1 = arith.constant 0 : i32
    return %c0_i32, %c0_i32_0 : i32, i32
  }
  func.func @transform_6(%arg0: i32) -> (i32, i32) {
    %c0_i32 = arith.constant 0 : i32
    %c0_i32_0 = arith.constant 0 : i32
    %c0_i32_1 = arith.constant 0 : i32
    return %c0_i32, %c0_i32_0 : i32, i32
  }
  func.func @transform_7(%arg0: i32) -> (i32, i32) {
    %c0_i32 = arith.constant 0 : i32
    %c0_i32_0 = arith.constant 0 : i32
    return %c0_i32, %arg0 : i32, i32
  }
}

</mosaic_0001>

<bundles_post_ra>
// kernel: tpu_custom_call.1
= control target key start
LH: loop header
LB: loop body
LE: loop exit
PB: predicated region body
PF: predicated region fallthrough
CT: control target
= control target key end

     0   :  { %v430_v2 = vmov 0   ;;  %vm85_vm0 = vcmask 64512   ;;  %s597_s0 = inlined_call_operand.vmem [shape: bf16[8,128], index: 0, kind: input, shape index: {}]   ;;  %s598_s1 = inlined_call_operand.vmem [shape: f32[64,8], index: 1, kind: input, shape index: {}]   ;;  %s599_s2 = inlined_call_operand.vmem [shape: f32[64,1], index: 2, kind: input, shape index: {}]   ;;  %s600_s3 = inlined_call_operand.vmem [shape: f32[64,64], index: 3, kind: input, shape index: {}]   ;;  %s601_s4 = inlined_call_operand.vmem [shape: f32[64,1], index: 4, kind: input, shape index: {}]   ;;  %s602_s5 = inlined_call_operand.vmem [shape: f32[4,64], index: 5, kind: input, shape index: {}]   ;;  %s603_s6 = inlined_call_operand.vmem [shape: f32[4,1], index: 6, kind: input, shape index: {}]   ;;  %s604_s7 = inlined_call_operand.hbm [shape: f32[4,128], index: 7, kind: output, shape index: {}]  }
   0x1   :  { %v42_v0 = vld [vmem:[%s599_s2 + $0x28] sm:$0xff]  ;;  %v27_v1 = vld [vmem:[%s597_s0] sm:$0xf]  ;;  %398 = vset.pattern.permute.xlu1 %v430_v2  ;;  %397 = vset.pattern.permute.xlu0 %v430_v2  ;;  %v44_v5 = vld [vmem:[%s599_s2 + $0x38] sm:$0xff] }
   0x2   :  { %v28_v3 = vunpack.c.l.bf16 %v27_v1  ;;  %v29_v4 = vld [vmem:[%s598_s1] sm:$0xff]  ;;  %72 = vperm.xlu1 %398, %v42_v0   ;;  %82 = vperm.xlu0 %397, %v44_v5   ;;  %v35_v6 = vld [vmem:[%s598_s1 + $0x30] sm:$0xff] }
   0x3   :  { %399 = vset.pattern.permute.xlu2 %v430_v2 }
   0x4   :  { %125 = vmatpush.msra.mxu0 %v28_v3  ;;  %386 = vmatpush.msra.mxu2 %v28_v3 }
   0x5   :  { %369 = vmatmul.msk.f32.vlgmr.msra.gmra.mxu0 %vm85_vm0, %v29_v4  ;;  %375 = vmatmul.msk.f32.vlgmr.msra.gmra.mxu2 %vm85_vm0, %v35_v6 }
   0x6   :  { %12 = vsyncpa [#allocation3], 0  ;;  %v41_v7 = vld [vmem:[%s599_s2 + $0x20] sm:$0xff]  ;;  %v43_v8 = vld [vmem:[%s599_s2 + $0x30] sm:$0xff]  ;;  %vm215_vm1 = vcmask 523264   ;;  %vm319_vm2 = vcmask 1043456  }
   0x7   :  { %v30_v9 = vld [vmem:[%s598_s1 + $0x8] sm:$0xff]  ;;  %v36_v10 = vld [vmem:[%s598_s1 + $0x38] sm:$0xff]  ;;  %v37_v12 = vld [vmem:[%s599_s2] sm:$0xff]  ;;  %s360_s19 = sshll.u32 %s604_s7, 4  ;;  %s361_s19 = int_to_ptr.hbm [resolvable:$true] %s360_s19 }
   0x8   :  { %v40_v11 = vld [vmem:[%s599_s2 + $0x18] sm:$0xff]  ;;  %v38_v13 = vld [vmem:[%s599_s2 + $0x8] sm:$0xff]  ;;  %v31_v14 = vld [vmem:[%s598_s1 + $0x10] sm:$0xff] }
   0x9   :  { %62 = vperm.xlu2 %399, %v40_v11   ;;  %v39_v15 = vld [vmem:[%s599_s2 + $0x10] sm:$0xff]  ;;  %v172_v17 = vld [vmem:[%s601_s4 + $0x28] sm:$0xff]  ;;  %v32_v18 = vld [vmem:[%s598_s1 + $0x18] sm:$0xff] }
   0xa   :  { %67 = vperm.xlu1 %398, %v41_v7   ;;  %77 = vperm.xlu0 %397, %v43_v8   ;;  %v173_v16 = vld [vmem:[%s601_s4 + $0x30] sm:$0xff]  ;;  %v174_v19 = vld [vmem:[%s601_s4 + $0x38] sm:$0xff]  ;;  %v33_v22 = vld [vmem:[%s598_s1 + $0x20] sm:$0xff] }
   0xb   :  { %v170_v20 = vld [vmem:[%s601_s4 + $0x18] sm:$0xff]  ;;  %v169_v21 = vld [vmem:[%s601_s4 + $0x10] sm:$0xff]  ;;  %v171_v23 = vld [vmem:[%s601_s4 + $0x20] sm:$0xff] }
   0xc   :  { %v167_v24 = vld [vmem:[%s601_s4] sm:$0xff]  ;;  %v34_v26 = vld [vmem:[%s598_s1 + $0x28] sm:$0xff]  ;;  %v161_v0 = vld [vmem:[%s600_s3 + $0x10] sm:$0xff] }
   0xd   :  { %370 = vmatmul.msk.f32.gmra.mxu0 %vm85_vm0, %v30_v9  ;;  %376 = vmatmul.msk.f32.gmra.mxu2 %vm85_vm0, %v36_v10  ;;  %v290_v25 = vld [vmem:[%s603_s6] sm:$0xf]  ;;  %v168_v27 = vld [vmem:[%s601_s4 + $0x8] sm:$0xff]  ;;  %v165_v1 = vld [vmem:[%s600_s3 + $0x30] sm:$0xff] }
   0xe   :  { %v159_v60 = vld [vmem:[%s600_s3] sm:$0xff]  ;;  %v160_v62 = vld [vmem:[%s600_s3 + $0x8] sm:$0xff]  ;;  %v162_v2 = vld [vmem:[%s600_s3 + $0x18] sm:$0xff] }
   0xf   :  { %v163_v61 = vld [vmem:[%s600_s3 + $0x20] sm:$0xff]  ;;  %v164_v63 = vld [vmem:[%s600_s3 + $0x28] sm:$0xff]  ;;  %v166_v3 = vld [vmem:[%s600_s3 + $0x38] sm:$0xff] }
  0x11   :  { %57 = vperm.xlu2 %399, %v39_v15  }
  0x12   :  { %47 = vperm.xlu1 %398, %v37_v12   ;;  %52 = vperm.xlu0 %397, %v38_v13  }
  0x15   :  { %371 = vmatmul.msk.f32.gmra.mxu0 %vm85_vm0, %v31_v14 }
  0x19   :  { %212 = vperm.xlu2 %399, %v174_v19  }
  0x1a   :  { %207 = vperm.xlu0 %397, %v173_v16   ;;  %202 = vperm.xlu1 %398, %v172_v17  }
  0x1d   :  { %372 = vmatmul.msk.f32.gmra.mxu0 %vm85_vm0, %v32_v18 }
  0x21   :  { %197 = vperm.xlu2 %399, %v171_v23  }
  0x22   :  { %192 = vperm.xlu0 %397, %v170_v20   ;;  %187 = vperm.xlu1 %398, %v169_v21  }
  0x25   :  { %373 = vmatmul.msk.f32.gmra.mxu0 %vm85_vm0, %v33_v22 }
  0x29   :  { %182 = vperm.xlu2 %399, %v168_v27  }
  0x2a   :  { %177 = vperm.xlu0 %397, %v167_v24   ;;  %293 = vperm.xlu1 %398, %v290_v25  }
  0x2d   :  { %374 = vmatmul.msk.f32.gmra.mxu0 %vm85_vm0, %v34_v26 }
  0x63   :  { %v63_v42 = vpop.permute.xlu2 %62 }
  0x6b   :  { %v58_v49 = vpop.permute.xlu2 %57 }
  0x73   :  { %v213_v8 = vpop.permute.xlu2 %212 }
  0x74   :  { %v83_v29 = vpop.permute.xlu0 %82  ;;  %v73_v40 = vpop.permute.xlu1 %72 }
  0x7b   :  { %v198_v13 = vpop.permute.xlu2 %197 }
  0x7c   :  { %v78_v32 = vpop.permute.xlu0 %77  ;;  %v68_v43 = vpop.permute.xlu1 %67 }
  0x82   :  { %v127_v28 = vpop.f32.mrf.mxu0 }
  0x84   :  { %v48_v52 = vpop.permute.xlu1 %47  ;;  %v53_v53 = vpop.permute.xlu0 %52 }
  0x85   :  { %v128_v56 = vadd.f32 %v127_v28, %v48_v52  ;;  %v183_v28 = vpop.permute.xlu2 %182 }
  0x87   :  { %v151_v59 = vmax.f32 %v128_v56, 0.0 }
  0x88   :  { %v145_v30 = vpop.f32.mrf.mxu2 }
  0x89   :  { %v146_v33 = vadd.f32 %v145_v30, %v78_v32 }
  0x8a   :  { %v130_v31 = vpop.f32.mrf.mxu0 }
  0x8b   :  { %v157_v37 = vmax.f32 %v146_v33, 0.0  ;;  %v131_v54 = vadd.f32 %v130_v31, %v53_v53 }
  0x8c   :  { %v208_v9 = vpop.permute.xlu0 %207  ;;  %v203_v12 = vpop.permute.xlu1 %202 }
  0x8d   :  { %v152_v58 = vmax.f32 %v131_v54, 0.0 }
  0x90   :  { %v148_v34 = vpop.f32.mrf.mxu2 }
  0x91   :  { %v149_v35 = vadd.f32 %v148_v34, %v83_v29 }
  0x92   :  { %v133_v36 = vpop.f32.mrf.mxu0 }
  0x93   :  { %v158_v38 = vmax.f32 %v149_v35, 0.0  ;;  %v134_v50 = vadd.f32 %v133_v36, %v58_v49  ;;  %v289_v36 = vld [vmem:[%s602_s5] sm:$0xf]  ;;  %s431_s5 = smov [#allocation2]  }
  0x94   :  { %v193_v17 = vpop.permute.xlu0 %192  ;;  %v188_v25 = vpop.permute.xlu1 %187  ;;  %s358_s16 = sshll.u32 %s431_s5, 4  ;;  %s359_s16 = int_to_ptr.vmem [resolvable:$true] %s358_s16 }
  0x95   :  { %248 = vmatpush.msra.mxu1 %v158_v38  ;;  %387 = vmatpush.msra.mxu3 %v158_v38  ;;  %v153_v57 = vmax.f32 %v134_v50, 0.0 }
  0x97   :  { %249 = vmatpush.msra.mxu1 %v157_v37  ;;  %388 = vmatpush.msra.mxu3 %v157_v37 }
  0x9a   :  { %v136_v39 = vpop.f32.mrf.mxu0 }
  0x9b   :  { %v137_v47 = vadd.f32 %v136_v39, %v63_v42 }
  0x9c   :  { %v178_v31 = vpop.permute.xlu0 %177  ;;  %v294_v37 = vpop.permute.xlu1 %293 }
  0x9d   :  { %v154_v55 = vmax.f32 %v137_v47, 0.0 }
  0xa2   :  { %v139_v41 = vpop.f32.mrf.mxu0 }
  0xa3   :  { %v140_v45 = vadd.f32 %v139_v41, %v68_v43 }
  0xa5   :  { %v155_v51 = vmax.f32 %v140_v45, 0.0 }
  0xaa   :  { %v142_v44 = vpop.f32.mrf.mxu0 }
  0xab   :  { %v143_v46 = vadd.f32 %v142_v44, %v73_v40 }
  0xad   :  { %v156_v48 = vmax.f32 %v143_v46, 0.0 }
  0xaf   :  { %250 = vmatpush.msra.mxu1 %v156_v48  ;;  %389 = vmatpush.msra.mxu3 %v156_v48 }
  0xb1   :  { %251 = vmatpush.msra.mxu1 %v155_v51  ;;  %390 = vmatpush.msra.mxu3 %v155_v51 }
  0xb3   :  { %252 = vmatpush.msra.mxu1 %v154_v55  ;;  %391 = vmatpush.msra.mxu3 %v154_v55 }
  0xb5   :  { %253 = vmatpush.msra.mxu1 %v153_v57  ;;  %392 = vmatpush.msra.mxu3 %v153_v57 }
  0xb7   :  { %254 = vmatpush.msra.mxu1 %v152_v58  ;;  %393 = vmatpush.msra.mxu3 %v152_v58 }
  0xb9   :  { %255 = vmatpush.msra.mxu1 %v151_v59  ;;  %394 = vmatpush.msra.mxu3 %v151_v59 }
  0xba   :  { %377 = vmatmul.msk.f32.vlgmr.msra.gmra.mxu1 %vm215_vm1, %v159_v60  ;;  %381 = vmatmul.msk.f32.vlgmr.msra.gmra.mxu3 %vm215_vm1, %v163_v61 }
  0xc2   :  { %378 = vmatmul.msk.f32.gmra.mxu1 %vm215_vm1, %v160_v62  ;;  %382 = vmatmul.msk.f32.gmra.mxu3 %vm215_vm1, %v164_v63 }
  0xca   :  { %379 = vmatmul.msk.f32.gmra.mxu1 %vm215_vm1, %v161_v0  ;;  %383 = vmatmul.msk.f32.gmra.mxu3 %vm215_vm1, %v165_v1 }
  0xd2   :  { %380 = vmatmul.msk.f32.gmra.mxu1 %vm215_vm1, %v162_v2  ;;  %384 = vmatmul.msk.f32.gmra.mxu3 %vm215_vm1, %v166_v3 }
 0x137   :  { %v257_v4 = vpop.f32.mrf.mxu1 }
 0x138   :  { %v258_v32 = vadd.f32 %v257_v4, %v178_v31 }
 0x13a   :  { %v281_v35 = vmax.f32 %v258_v32, 0.0 }
 0x13d   :  { %v269_v5 = vpop.f32.mrf.mxu3 }
 0x13e   :  { %v270_v21 = vadd.f32 %v269_v5, %v198_v13 }
 0x13f   :  { %v260_v6 = vpop.f32.mrf.mxu1 }
 0x140   :  { %v285_v26 = vmax.f32 %v270_v21, 0.0  ;;  %v261_v29 = vadd.f32 %v260_v6, %v183_v28 }
 0x142   :  { %v282_v34 = vmax.f32 %v261_v29, 0.0 }
 0x145   :  { %v272_v7 = vpop.f32.mrf.mxu3 }
 0x146   :  { %v273_v18 = vadd.f32 %v272_v7, %v203_v12 }
 0x147   :  { %v263_v11 = vpop.f32.mrf.mxu1 }
 0x148   :  { %v286_v23 = vmax.f32 %v273_v18, 0.0  ;;  %v264_v27 = vadd.f32 %v263_v11, %v188_v25 }
 0x14a   :  { %v283_v33 = vmax.f32 %v264_v27, 0.0 }
 0x14d   :  { %v275_v10 = vpop.f32.mrf.mxu3 }
 0x14e   :  { %v276_v15 = vadd.f32 %v275_v10, %v208_v9 }
 0x14f   :  { %v266_v20 = vpop.f32.mrf.mxu1 }
 0x150   :  { %v287_v22 = vmax.f32 %v276_v15, 0.0  ;;  %v267_v24 = vadd.f32 %v266_v20, %v193_v17 }
 0x152   :  { %v284_v30 = vmax.f32 %v267_v24, 0.0 }
 0x155   :  { %v278_v14 = vpop.f32.mrf.mxu3 }
 0x156   :  { %v279_v16 = vadd.f32 %v278_v14, %v213_v8 }
 0x158   :  { %v288_v19 = vmax.f32 %v279_v16, 0.0 }
 0x15a   :  { %307 = vmatpush.msrb.mxu2 %v288_v19 }
 0x15c   :  { %308 = vmatpush.msrb.mxu2 %v287_v22 }
 0x15e   :  { %309 = vmatpush.msrb.mxu2 %v286_v23 }
 0x160   :  { %310 = vmatpush.msrb.mxu2 %v285_v26 }
 0x162   :  { %311 = vmatpush.msrb.mxu2 %v284_v30 }
 0x164   :  { %312 = vmatpush.msrb.mxu2 %v283_v33 }
 0x166   :  { %313 = vmatpush.msrb.mxu2 %v282_v34 }
 0x168   :  { %314 = vmatpush.msrb.mxu2 %v281_v35 }
 0x169   :  { %385 = vmatmul.msk.f32.vlgmr.msrb.gmra.mxu2 %vm215_vm1, %v289_v36 }
 0x1ec   :  { %v316_v38 = vpop.f32.mrf.mxu2 }
 0x1ed   :  { %v317_v39 = vadd.f32 %v316_v38, %v294_v37 }
 0x1ef   :  { %v320_v40 = vsel %vm319_vm2, %v317_v39, -inf }
 0x1f0   :  { %v321_v41 = vrot.slane %v320_v40, 4 }
 0x1f2   :  { %v322_v42 = vmax.f32 %v320_v40, %v321_v41 }
 0x1f4   :  { %v323_v43 = vrot.slane %v322_v42, 2 }
 0x1f6   :  { %v324_v44 = vmax.f32 %v322_v42, %v323_v43 }
 0x1f8   :  { %v325_v45 = vrot.slane %v324_v44, 1 }
 0x1fa   :  { %v326_v46 = vmax.f32 %v324_v44, %v325_v45 }
 0x1fc   :  { %v327_v47 = vsub.f32 %v317_v39, %v326_v46 }
 0x1fe   :  { %v328_v48 = vmul.f32 1.442695, %v327_v47 }
 0x200   :  { %400 = vpow2.f32 %v328_v48 }
 0x206   :  { %v401_v49 = vpop.eup %400 }
 0x207   :  { %v330_v50 = vsel %vm319_vm2, %v401_v49, 0.0 }
 0x208   :  { %v331_v51 = vrot.slane %v330_v50, 4 }
 0x20a   :  { %v332_v52 = vadd.f32 %v331_v51, %v330_v50 }
 0x20c   :  { %v333_v53 = vrot.slane %v332_v52, 2 }
 0x20e   :  { %v334_v54 = vadd.f32 %v333_v53, %v332_v52 }
 0x210   :  { %v335_v55 = vrot.slane %v334_v54, 1 }
 0x212   :  { %v336_v56 = vadd.f32 %v335_v55, %v334_v54 }
 0x214   :  { %402 = vrcp.f32 %v336_v56  ;;  %v348_v60 = vand.u32 2147483648, %v336_v56  ;;  %v346_v62 = vand.u32 2147483647, %v336_v56  ;;  %vm342_vm4 = vweird.f32 %v336_v56 }
 0x216   :  { %v349_v0 = vor.u32 1.1754944e-38, %v348_v60  ;;  %vm347_vm6 = vcmp.eq.f32.partialorder %v346_v62, 8.507059e+37 }
 0x21a   :  { %v403_v57 = vpop.eup %402 }
 0x21b   :  { %v338_v58 = vmul.f32 %v403_v57, %v336_v56  ;;  %vm343_vm3 = vweird.f32 %v403_v57 }
 0x21c   :  { %vm344_vm5 = vmor %vm342_vm4, %vm343_vm3 }
 0x21d   :  { %v339_v59 = vsub.f32 1.0, %v338_v58 }
 0x21f   :  { %v340_v61 = vmul.f32 %v403_v57, %v339_v59 }
 0x221   :  { %v341_v63 = vadd.f32 %v403_v57, %v340_v61 }
 0x223   :  { %v345_v1 = vsel %vm344_vm5, %v403_v57, %v341_v63 }
 0x224   :  { %v350_v2 = vsel %vm347_vm6, %v349_v0, %v345_v1 }
 0x225   :  { %v351_v3 = vmul.f32 %v401_v49, %v350_v2 }
 0x227   :  { %352 = vst [vmem:[#allocation2] sm:$0xf] %v351_v3 }
 0x228   :  { %363 = dma.vmem_to_hbm [thread:$0]  %s359_s16, 64, %s361_s19, [#allocation3]  }
 0x229   :  { %428 = dma.done.wait [#allocation3], 64  }
 0x22a   :  { %429 = vsyncadd [#allocation3], 4294967232 }
 0x22b   :  { %368 = vsyncpa [#allocation3], 1 }

</bundles_post_ra>
